<compile_context>
chip_gen: v7x
topology: tpu7x:2x2x1
jax: 0.10.0
libtpu: 0.0.40
codegen_flags: <defaults>
</compile_context>

<pallas_src>
import functools

import jax
import jax.numpy as jnp
from jax.experimental import pallas as pl
from jax.experimental.pallas import tpu as pltpu

IN_FEATURES = 794   # 784 flattened pixels + 10 one-hot label
HIDDEN = 256
OUT_FEATURES = 1


def _round_up(n, m):
    return ((n + m - 1) // m) * m


def discriminator_kernel(x_ref, w1_ref, b1_ref, w2_ref, b2_ref, o_ref):
    # Layer 1 (MXU): bf16 inputs, f32 accumulation. astype is a no-op if the
    # caller already supplies bf16 x.
    x = x_ref[...].astype(jnp.bfloat16)
    h = jnp.dot(x, w1_ref[...], preferred_element_type=jnp.float32)
    h = jnp.maximum(h + b1_ref[...], 0.0)          # bias + ReLU on the VPU
    # Dropout(p=0.1) -> identity in eval mode.
    # TODO(synk): training-mode dropout would need pltpu.prng_seed +
    # pltpu.stateful_bernoulli with a distinct per-grid-step seed.

    # Layer 2: contract w2 (1, H) against h (tb, H) over the hidden axis so the
    # result is produced lane-dense as (1, tb). Kept in f32 (tiny matmul, no
    # extra bf16 rounding of h).
    logits = jnp.einsum("oh,bh->ob", w2_ref[...], h,
                        preferred_element_type=jnp.float32)
    logits = logits + b2_ref[...]                  # (1, 1) broadcasts over tb
    # Sigmoid with the reciprocal on the EUP slot (free under the DMA).
    probs = pl.reciprocal(1.0 + jnp.exp(-logits), approx=True)
    o_ref[...] = probs.astype(o_ref.dtype)


def _choose_tile(batch, tile_b):
    # Never bigger than the (sublane-aligned) batch.
    tb = min(tile_b, _round_up(batch, 8))
    # Large batch that would fit in a single tile: split in two so both v7x
    # TensorCores get work under megacore sharding (neutral on v5e/v6e).
    if batch > 512 and pl.cdiv(batch, tb) == 1:
        tb = _round_up(pl.cdiv(batch, 2), 128)
    return _round_up(tb, 8)


@functools.partial(jax.jit, static_argnames=("tile_b",))
def discriminator_forward(x, w1, b1, w2, b2, *, tile_b=1024):
    """x: (B, 794); w1: (794, 256) [pre-transposed]; b1: (1, 256) or (256,);
    w2: (256, 1) / (1, 256) / (256,); b2: (1, 1) or (1,). Returns (B, 1)."""
    batch = x.shape[0]
    tb = _choose_tile(batch, tile_b)
    num_tiles = pl.cdiv(batch, tb)

    # W1 in bf16 (native MXU rate, half the weight bytes); everything else f32.
    w1 = w1.astype(jnp.bfloat16)
    w2_row = w2.reshape(1, HIDDEN).astype(jnp.float32)
    b1 = b1.reshape(1, HIDDEN).astype(jnp.float32)
    b2 = b2.reshape(1, OUT_FEATURES).astype(jnp.float32)

    out = pl.pallas_call(
        discriminator_kernel,
        out_shape=jax.ShapeDtypeStruct((num_tiles, 1, tb), jnp.float32),
        grid=(num_tiles,),
        in_specs=[
            # x: batch-tiled; ragged last tile allowed (junk rows sliced off).
            pl.BlockSpec((tb, IN_FEATURES), lambda i: (i, 0)),
            # Parameters: constant index maps -> VMEM-resident across tiles.
            pl.BlockSpec((IN_FEATURES, HIDDEN), lambda i: (0, 0)),
            pl.BlockSpec((1, HIDDEN), lambda i: (0, 0)),
            pl.BlockSpec((1, HIDDEN), lambda i: (0, 0)),
            pl.BlockSpec((1, OUT_FEATURES), lambda i: (0, 0)),
        ],
        # Lane-dense output: one (1, tb) row per tile (unmasked full-width vst).
        out_specs=pl.BlockSpec((None, 1, tb), lambda i: (i, 0, 0)),
        compiler_params=pltpu.CompilerParams(
            dimension_semantics=("parallel",),   # batch tiles are independent
            vmem_limit_bytes=48 << 20,           # room for 2048-row tiles on v5e too
        ),
    )(x, w1, b1, w2_row, b2)
    return out.reshape(num_tiles * tb, OUT_FEATURES)[:batch]


def init_params(key):
    # Deterministic PyTorch-style init: U(-1/sqrt(fan_in), 1/sqrt(fan_in)).
    k1, k2, k3, k4 = jax.random.split(key, 4)
    bound1 = 1.0 / jnp.sqrt(IN_FEATURES)
    bound2 = 1.0 / jnp.sqrt(HIDDEN)
    # Stored as (in_features, out_features) -- transposed vs. PyTorch's (out, in).
    w1 = jax.random.uniform(k1, (IN_FEATURES, HIDDEN), jnp.float32, -bound1, bound1)
    b1 = jax.random.uniform(k2, (1, HIDDEN), jnp.float32, -bound1, bound1)
    w2 = jax.random.uniform(k3, (HIDDEN, OUT_FEATURES), jnp.float32, -bound2, bound2)
    b2 = jax.random.uniform(k4, (1, OUT_FEATURES), jnp.float32, -bound2, bound2)
    return w1, b1, w2, b2


def reference_forward(x, w1, b1, w2, b2):
    h = jnp.maximum(x @ w1 + b1, 0.0)
    return 1.0 / (1.0 + jnp.exp(-(h @ w2 + b2)))


if __name__ == "__main__":
    key = jax.random.PRNGKey(0)
    kx, kp = jax.random.split(key)

    B = 16  # small batch
    # Discriminator input = concat(flattened 28x28 image, one-hot label) -> 794.
    x = jax.random.normal(kx, (B, IN_FEATURES), jnp.float32)
    w1, b1, w2, b2 = init_params(kp)
    ref = reference_forward(x, w1, b1, w2, b2)

    # 1) Multi-tile grid path (tile_b=8 -> 2 grid steps at this small batch).
    out = jax.block_until_ready(discriminator_forward(x, w1, b1, w2, b2, tile_b=8))
    assert out.shape == (B, OUT_FEATURES), out.shape
    # bf16 MXU inputs with f32 accumulation -> small numeric delta vs f32 ref.
    assert jnp.allclose(out, ref, atol=1e-2, rtol=1e-2), float(
        jnp.max(jnp.abs(out - ref)))

    # 2) Ragged last tile: batch not a multiple of the tile, no wrapper pad.
    Br = 13
    out_r = jax.block_until_ready(discriminator_forward(x[:Br], w1, b1, w2, b2))
    assert out_r.shape == (Br, OUT_FEATURES), out_r.shape
    assert jnp.allclose(out_r, ref[:Br], atol=1e-2, rtol=1e-2), float(
        jnp.max(jnp.abs(out_r - ref[:Br])))

    print("KERNEL_OK")
</pallas_src>

<mosaic_0001>
module attributes {stable_mosaic.version = 11 : i64} {
  func.func @discriminator_kernel(%arg0: i32, %arg1: memref<8x794xf32, #tpu.memory_space<vmem>>, %arg2: memref<794x256xbf16, #tpu.memory_space<vmem>>, %arg3: memref<1x256xf32, #tpu.memory_space<vmem>>, %arg4: memref<1x256xf32, #tpu.memory_space<vmem>>, %arg5: memref<1x1xf32, #tpu.memory_space<vmem>>, %arg6: memref<1x1x8xf32, #tpu.memory_space<vmem>>) attributes {dimension_semantics = [#tpu.dimension_semantics<parallel>], iteration_bounds = array<i64: 2>, scalar_prefetch = 0 : i64, scratch_operands = 0 : i64, tpu.core_type = #tpu.core_type<tc>, window_params = [{transform_indices = @transform_0, window_bounds = array<i64: 8, 794>}, {pipeline_mode = #tpu.pipeline_mode<synchronous>, transform_indices = @transform_1, window_bounds = array<i64: 794, 256>}, {pipeline_mode = #tpu.pipeline_mode<synchronous>, transform_indices = @transform_2, window_bounds = array<i64: 1, 256>}, {pipeline_mode = #tpu.pipeline_mode<synchronous>, transform_indices = @transform_3, window_bounds = array<i64: 1, 256>}, {pipeline_mode = #tpu.pipeline_mode<synchronous>, transform_indices = @transform_4, window_bounds = array<i64: 1, 1>}, {transform_indices = @transform_5, window_bounds = array<i64: 1, 1, 8>}]} {
    %c0 = arith.constant 0 : index
    %c0_0 = arith.constant 0 : index
    %0 = vector.load %arg1[%c0, %c0_0] : memref<8x794xf32, #tpu.memory_space<vmem>>, vector<8x794xf32>
    %1 = arith.truncf %0 : vector<8x794xf32> to vector<8x794xbf16>
    %c0_1 = arith.constant 0 : index
    %c0_2 = arith.constant 0 : index
    %2 = vector.load %arg2[%c0_1, %c0_2] : memref<794x256xbf16, #tpu.memory_space<vmem>>, vector<794x256xbf16>
    %cst = arith.constant dense<0.000000e+00> : vector<8x256xf32>
    %3 = tpu.matmul %1, %2, %cst {dimension_numbers = #tpu.dot_dimension_numbers<[1], [0], [0], [1], [0, 0, 1, 1], [], []>} : vector<8x794xbf16>, vector<794x256xbf16>, vector<8x256xf32> -> vector<8x256xf32>
    %c0_3 = arith.constant 0 : index
    %c0_4 = arith.constant 0 : index
    %4 = vector.load %arg3[%c0_3, %c0_4] : memref<1x256xf32, #tpu.memory_space<vmem>>, vector<1x256xf32>
    %5 = vector.broadcast %4 : vector<1x256xf32> to vector<8x256xf32>
    %6 = arith.addf %3, %5 : vector<8x256xf32>
    %cst_5 = arith.constant 0.000000e+00 : f32
    %7 = vector.broadcast %cst_5 : f32 to vector<8x256xf32>
    %8 = arith.maximumf %6, %7 : vector<8x256xf32>
    %c0_6 = arith.constant 0 : index
    %c0_7 = arith.constant 0 : index
    %9 = vector.load %arg4[%c0_6, %c0_7] : memref<1x256xf32, #tpu.memory_space<vmem>>, vector<1x256xf32>
    "tpu.trace_start"() <{level = 10 : i32, message = "oh,bh->ob"}> : () -> ()
    %cst_8 = arith.constant dense<0.000000e+00> : vector<1x8xf32>
    %10 = tpu.matmul %9, %8, %cst_8 {dimension_numbers = #tpu.dot_dimension_numbers<[1], [1], [0], [0], [0, 0, 1, 0], [], []>} : vector<1x256xf32>, vector<8x256xf32>, vector<1x8xf32> -> vector<1x8xf32>
    "tpu.trace_stop"() : () -> ()
    %c0_9 = arith.constant 0 : index
    %c0_10 = arith.constant 0 : index
    %11 = vector.load %arg5[%c0_9, %c0_10] : memref<1x1xf32, #tpu.memory_space<vmem>>, vector<1x1xf32>
    %12 = vector.broadcast %11 : vector<1x1xf32> to vector<1x8xf32>
    %13 = arith.addf %10, %12 : vector<1x8xf32>
    %cst_11 = arith.constant 0.000000e+00 : f32
    %14 = vector.broadcast %cst_11 : f32 to vector<1x8xf32>
    %15 = arith.subf %14, %13 : vector<1x8xf32>
    %16 = math.exp %15 : vector<1x8xf32>
    %cst_12 = arith.constant 1.000000e+00 : f32
    %17 = vector.broadcast %cst_12 : f32 to vector<1x8xf32>
    %18 = arith.addf %17, %16 : vector<1x8xf32>
    %19 = tpu.reciprocal %18 {approx = true} : vector<1x8xf32> -> vector<1x8xf32>
    %c0_13 = arith.constant 0 : index
    %c0_14 = arith.constant 0 : index
    %c0_15 = arith.constant 0 : index
    %20 = vector.load %arg6[%c0_13, %c0_14, %c0_15] : memref<1x1x8xf32, #tpu.memory_space<vmem>>, vector<1x1x8xf32>
    %21 = vector.shape_cast %20 : vector<1x1x8xf32> to vector<1x8xf32>
    %22 = vector.shape_cast %19 : vector<1x8xf32> to vector<1x1x8xf32>
    tpu.vector_store %arg6[%c0_13, %c0_14, %c0_15], %22 {strides = array<i32>} : memref<1x1x8xf32, #tpu.memory_space<vmem>>, vector<1x1x8xf32>,
    return
  }
  func.func @transform_0(%arg0: i32) -> (i32, i32) {
    %c0_i32 = arith.constant 0 : i32
    %c0_i32_0 = arith.constant 0 : i32
    return %arg0, %c0_i32 : i32, i32
  }
  func.func @transform_1(%arg0: i32) -> (i32, i32) {
    %c0_i32 = arith.constant 0 : i32
    %c0_i32_0 = arith.constant 0 : i32
    %c0_i32_1 = arith.constant 0 : i32
    return %c0_i32, %c0_i32_0 : i32, i32
  }
  func.func @transform_2(%arg0: i32) -> (i32, i32) {
    %c0_i32 = arith.constant 0 : i32
    %c0_i32_0 = arith.constant 0 : i32
    %c0_i32_1 = arith.constant 0 : i32
    return %c0_i32, %c0_i32_0 : i32, i32
  }
  func.func @transform_3(%arg0: i32) -> (i32, i32) {
    %c0_i32 = arith.constant 0 : i32
    %c0_i32_0 = arith.constant 0 : i32
    %c0_i32_1 = arith.constant 0 : i32
    return %c0_i32, %c0_i32_0 : i32, i32
  }
  func.func @transform_4(%arg0: i32) -> (i32, i32) {
    %c0_i32 = arith.constant 0 : i32
    %c0_i32_0 = arith.constant 0 : i32
    %c0_i32_1 = arith.constant 0 : i32
    return %c0_i32, %c0_i32_0 : i32, i32
  }
  func.func @transform_5(%arg0: i32) -> (i32, i32, i32) {
    %c0_i32 = arith.constant 0 : i32
    %c0_i32_0 = arith.constant 0 : i32
    %c0_i32_1 = arith.constant 0 : i32
    return %arg0, %c0_i32, %c0_i32_0 : i32, i32, i32
  }
}

</mosaic_0001>

<bundles_post_ra>
// kernel: discriminator_forward.1
= control target key start
LH: loop header
LB: loop body
LE: loop exit
PB: predicated region body
PF: predicated region fallthrough
CT: control target
= control target key end

     0   :  { %s1498_s20 = smov 0   ;;  %s1836_s0 = inlined_call_operand.vmem [shape: f32[16,794], index: 0, kind: input, shape index: {}]   ;;  %s1837_s1 = inlined_call_operand.vmem [shape: bf16[794,256], index: 1, kind: input, shape index: {}]   ;;  %s1838_s2 = inlined_call_operand.vmem [shape: f32[1,256], index: 2, kind: input, shape index: {}]   ;;  %s1839_s3 = inlined_call_operand.vmem [shape: f32[1,256], index: 3, kind: input, shape index: {}]   ;;  %s1840_s4 = inlined_call_operand.<no memory space> [shape: f32[1,1], index: 4, kind: input, shape index: {}]   ;;  %s1841_s5 = inlined_call_operand.vmem [shape: f32[2,1,8], index: 5, kind: output, shape index: {}]  }
   0x1   :  { %v10_v0 = vstv %s1840_s4 }
   0x2   :  { %11 = vst [vmem:[#allocation2] sm:$0x1] %v10_v0 }
   0x3 LB: > { %s1171_s21 = sadd.s32 4294967295, %s1462_s20   ;;  %p1175_p0 = scmp.ge.s32.totalorder %s1462_s20, 1  ;;  %s1462_s20 = sphi %s1498_s20, %s17_s20  }
   0x4   : > { %p189_p1 = scmp.lt.s32.totalorder %s1462_s20, 3 }
   0x6   : > { %p190_p2 = pnand %p1175_p0, %p189_p1 }
   0x7   : > { %v1302_v1 = vld [vmem:[%s1837_s1 + $0x104] ss:$8 sps:$4 sm:$0xff] (!%p190_p2)   ;;  %v1304_v2 = vld [vmem:[%s1837_s1 + $0x100] ss:$8 sps:$4 sm:$0xff] (!%p190_p2)   ;;  %v1305_v3 = vld [vmem:[%s1837_s1 + $0x114] ss:$8 sps:$4 sm:$0xff] (!%p190_p2)  }
   0x8   : > { %193 = sbr.rel (%p190_p2) target bundleno = 602 (0x25a), region = 40  ;;  %900 = vmatprep.subr.bf16.mxu0 (!%p190_p2), %v1302_v1  ;;  %v1464_v4 = vmov (!%p190_p2), 0   ;;  %v1307_v5 = vld [vmem:[%s1837_s1 + $0x110] ss:$8 sps:$4 sm:$0xff] (!%p190_p2)   ;;  %v1308_v6 = vld [vmem:[%s1837_s1 + $0x124] ss:$8 sps:$4 sm:$0xff] (!%p190_p2)  }
   0x9   : > { %1301 = vset.pattern.permute.xlu0 (!%p190_p2), %v1464_v4  ;;  %901 = vmatpush1.bf16.msra.mxu0 (!%p190_p2), %v1304_v2  ;;  %v1310_v7 = vld [vmem:[%s1837_s1 + $0x120] ss:$8 sps:$4 sm:$0xff] (!%p190_p2)   ;;  %v1311_v8 = vld [vmem:[%s1837_s1 + $0x134] ss:$8 sps:$4 sm:$0xff] (!%p190_p2)   ;;  %p215_p3 = scmp.lt.s32.totalorder (!%p190_p2), %s1171_s21, 1  ;;  %vm852_vm0 = vcmask (!%p190_p2), 1044480  }
   0xa   : > { %902 = vmatprep.subr.bf16.mxu0 (!%p190_p2), %v1305_v3  ;;  %v1313_v9 = vld [vmem:[%s1837_s1 + $0x130] ss:$8 sps:$4 sm:$0xff] (!%p190_p2)   ;;  %v1314_v10 = vld [vmem:[%s1837_s1 + $0x144] ss:$8 sps:$4 sm:$0xff] (!%p190_p2)   ;;  %v1316_v11 = vld [vmem:[%s1837_s1 + $0x140] ss:$8 sps:$4 sm:$0xff] (!%p190_p2)  }
   0xb   : > { %v1317_v12 = vld [vmem:[%s1837_s1 + $0x154] ss:$8 sps:$4 sm:$0xff] (!%p190_p2)   ;;  %v1319_v13 = vld [vmem:[%s1837_s1 + $0x150] ss:$8 sps:$4 sm:$0xff] (!%p190_p2)   ;;  %v1344_v14 = vld [vmem:[%s1837_s1 + $0x4] ss:$8 sps:$4 sm:$0xff] (!%p190_p2)  }
   0xc   : > { %v1346_v15 = vld [vmem:[%s1837_s1] ss:$8 sps:$4 sm:$0xff] (!%p190_p2)   ;;  %v1320_v16 = vld [vmem:[%s1837_s1 + $0x164] ss:$8 sps:$4 sm:$0xff] (!%p190_p2)   ;;  %859 = vmatprep.subr.bf16.mxu1 (!%p190_p2), %v1344_v14  ;;  %v1350_v17 = vld [vmem:[%s1837_s1 + $0x14] ss:$8 sps:$4 sm:$0xff] (!%p190_p2)  }
   0xd   : > { %903 = vmatpush1.bf16.msra.mxu0 (!%p190_p2), %v1307_v5  ;;  %860 = vmatpush1.bf16.msra.mxu1 (!%p190_p2), %v1346_v15  ;;  %v1352_v18 = vld [vmem:[%s1837_s1 + $0x10] ss:$8 sps:$4 sm:$0xff] (!%p190_p2)   ;;  %v1322_v19 = vld [vmem:[%s1837_s1 + $0x160] ss:$8 sps:$4 sm:$0xff] (!%p190_p2)   ;;  %v1323_v20 = vld [vmem:[%s1837_s1 + $0x174] ss:$8 sps:$4 sm:$0xff] (!%p190_p2)  }
   0xe   : > { %904 = vmatprep.subr.bf16.mxu0 (!%p190_p2), %v1308_v6  ;;  %861 = vmatprep.subr.bf16.mxu1 (!%p190_p2), %v1350_v17  ;;  %v1356_v21 = vld [vmem:[%s1837_s1 + $0x24] ss:$8 sps:$4 sm:$0xff] (!%p190_p2)   ;;  %v1358_v23 = vld [vmem:[%s1837_s1 + $0x20] ss:$8 sps:$4 sm:$0xff] (!%p190_p2)   ;;  %v1325_v25 = vld [vmem:[%s1837_s1 + $0x170] ss:$8 sps:$4 sm:$0xff] (!%p190_p2)  }
   0xf   : > { %s1843_s21 = smov (!%p215_p3, %s1171_s21), 1  ;;  %v1326_v26 = vld [vmem:[%s1837_s1 + $0x184] ss:$8 sps:$4 sm:$0xff]   ;;  %v1362_v27 = vld [vmem:[%s1837_s1 + $0x34] ss:$8 sps:$4 sm:$0xff]   ;;  %vm848_vm1 = vcmask 211968  }
  0x10   : > { %s1291_s22 = smul.u32 56, %s1843_s21  ;;  %v1328_v28 = vld [vmem:[%s1837_s1 + $0x180] ss:$8 sps:$4 sm:$0xff]   ;;  %v1364_v29 = vld [vmem:[%s1837_s1 + $0x30] ss:$8 sps:$4 sm:$0xff]   ;;  %vm1122_vm2 = vcmask 57344  }
  0x11   : > { %905 = vmatpush1.bf16.msra.mxu0 %v1310_v7  ;;  %862 = vmatpush1.bf16.msra.mxu1 %v1352_v18  ;;  %v1368_v30 = vld [vmem:[%s1837_s1 + $0x44] ss:$8 sps:$4 sm:$0xff]   ;;  %v1329_v31 = vld [vmem:[%s1837_s1 + $0x194] ss:$8 sps:$4 sm:$0xff]   ;;  %v1331_v32 = vld [vmem:[%s1837_s1 + $0x190] ss:$8 sps:$4 sm:$0xff]  }
  0x12   : > { %906 = vmatprep.subr.bf16.mxu0 %v1311_v8  ;;  %s1564_s9 = scalar_lea.vmem %s1836_s0, %s1291_s22  ;;  %863 = vmatprep.subr.bf16.mxu1 %v1356_v21  ;;  %v1370_v33 = vld [vmem:[%s1837_s1 + $0x40] ss:$8 sps:$4 sm:$0xff]   ;;  %v1374_v34 = vld [vmem:[%s1837_s1 + $0x54] ss:$8 sps:$4 sm:$0xff]   ;;  %v1332_v35 = vld [vmem:[%s1837_s1 + $0x1a4] ss:$8 sps:$4 sm:$0xff]   ;;  %s222_s22 = scalar_lea.vmem %s1841_s5, %s1843_s21 }
  0x13   : > { %v227_v22 = vld [vmem:[%s1564_s9 + $0x18] sm:$0xff]  ;;  %v1334_v36 = vld [vmem:[%s1837_s1 + $0x1a0] ss:$8 sps:$4 sm:$0xff]   ;;  %v1380_v38 = vld [vmem:[%s1837_s1 + $0x64] ss:$8 sps:$4 sm:$0xff]  }
  0x14   : > { %v234_v24 = vpack.c.bf16 %v227_v22, %v227_v22  ;;  %v1376_v37 = vld [vmem:[%s1837_s1 + $0x50] ss:$8 sps:$4 sm:$0xff]   ;;  %v1335_v39 = vld [vmem:[%s1837_s1 + $0x1b4] ss:$8 sps:$4 sm:$0xff]   ;;  %v1382_v41 = vld [vmem:[%s1837_s1 + $0x60] ss:$8 sps:$4 sm:$0xff]  }
  0x15   : > { %907 = vmatpush1.bf16.msra.mxu0 %v1313_v9  ;;  %864 = vmatpush1.bf16.msra.mxu1 %v1358_v23  ;;  %v1337_v40 = vld [vmem:[%s1837_s1 + $0x1b0] ss:$8 sps:$4 sm:$0xff]   ;;  %v1386_v42 = vld [vmem:[%s1837_s1 + $0x74] ss:$8 sps:$4 sm:$0xff]   ;;  %v1338_v43 = vld [vmem:[%s1837_s1 + $0x1c4] ss:$8 sps:$4 sm:$0xff]  }
  0x16   : > { %908 = vmatprep.subr.bf16.mxu0 %v1314_v10  ;;  %932 = vmatprep.mubr.bf16.mxu0 %v234_v24  ;;  %v1340_v44 = vld [vmem:[%s1837_s1 + $0x1c0] ss:$8 sps:$4 sm:$0xff]   ;;  %v1388_v45 = vld [vmem:[%s1837_s1 + $0x70] ss:$8 sps:$4 sm:$0xff]   ;;  %v1392_v46 = vld [vmem:[%s1837_s1 + $0x84] ss:$8 sps:$4 sm:$0xff]  }
  0x17   : > { %865 = vmatprep.subr.bf16.mxu1 %v1362_v27  ;;  %v1341_v47 = vld [vmem:[%s1837_s1 + $0x1d4] ss:$8 sps:$4 sm:$0xff]   ;;  %v1343_v48 = vld [vmem:[%s1837_s1 + $0x1d0] ss:$8 sps:$4 sm:$0xff]   ;;  %v1394_v49 = vld [vmem:[%s1837_s1 + $0x80] ss:$8 sps:$4 sm:$0xff]  }
  0x18   : > { %v1398_v50 = vld [vmem:[%s1837_s1 + $0x94] ss:$8 sps:$4 sm:$0xff]   ;;  %v1347_v51 = vld [vmem:[%s1837_s1 + $0x1e4] ss:$8 sps:$4 sm:$0xff]   ;;  %v1349_v52 = vld [vmem:[%s1837_s1 + $0x1e0] ss:$8 sps:$4 sm:$0xff]  }
  0x19   : > { %909 = vmatpush1.bf16.msra.mxu0 %v1316_v11  ;;  %866 = vmatpush1.bf16.msra.mxu1 %v1364_v29  ;;  %v1400_v53 = vld [vmem:[%s1837_s1 + $0x90] ss:$8 sps:$4 sm:$0xff]   ;;  %v1404_v54 = vld [vmem:[%s1837_s1 + $0xa4] ss:$8 sps:$4 sm:$0xff]   ;;  %v1353_v55 = vld [vmem:[%s1837_s1 + $0x1f4] ss:$8 sps:$4 sm:$0xff]  }
  0x1a   : > { %910 = vmatprep.subr.bf16.mxu0 %v1317_v12  ;;  %867 = vmatprep.subr.bf16.mxu1 %v1368_v30  ;;  %v1355_v56 = vld [vmem:[%s1837_s1 + $0x1f0] ss:$8 sps:$4 sm:$0xff]   ;;  %v1406_v58 = vld [vmem:[%s1837_s1 + $0xa0] ss:$8 sps:$4 sm:$0xff]   ;;  %v1410_v59 = vld [vmem:[%s1837_s1 + $0xb4] ss:$8 sps:$4 sm:$0xff]  }
  0x1b   : > { %v226_v57 = vld [vmem:[%s1564_s9 + $0x10] sm:$0xff]  ;;  %v1361_v60 = vld [vmem:[%s1837_s1 + $0x204] ss:$8 sps:$4 sm:$0xff]   ;;  %v1359_v0 = vld [vmem:[%s1837_s1 + $0x200] ss:$8 sps:$4 sm:$0xff]  }
  0x1c   : > { %v233_v61 = vpack.c.bf16 %v226_v57, %v226_v57  ;;  %v1412_v62 = vld [vmem:[%s1837_s1 + $0xb0] ss:$8 sps:$4 sm:$0xff]   ;;  %v225_v63 = vld [vmem:[%s1564_s9 + $0x8] sm:$0xff]  ;;  %v1367_v3 = vld [vmem:[%s1837_s1 + $0x214] ss:$8 sps:$4 sm:$0xff]  }
  0x1d   : > { %911 = vmatpush1.bf16.msra.mxu0 %v1319_v13  ;;  %868 = vmatpush1.bf16.msra.mxu1 %v1370_v33  ;;  %v1416_v1 = vld [vmem:[%s1837_s1 + $0xc4] ss:$8 sps:$4 sm:$0xff]   ;;  %v232_v2 = vpack.c.bf16 %v225_v63, %v225_v63  ;;  %v1418_v5 = vld [vmem:[%s1837_s1 + $0xc0] ss:$8 sps:$4 sm:$0xff]   ;;  %v1365_v6 = vld [vmem:[%s1837_s1 + $0x210] ss:$8 sps:$4 sm:$0xff]  }
  0x1e   : > { %912 = vmatprep.subr.bf16.mxu0 %v1320_v16  ;;  %869 = vmatprep.subr.bf16.mxu1 %v1374_v34  ;;  %v1422_v7 = vld [vmem:[%s1837_s1 + $0xd4] ss:$8 sps:$4 sm:$0xff]   ;;  %v229_v8 = vld [vmem:[%s1564_s9 + $0x28] sm:$0xff]  ;;  %v1424_v11 = vld [vmem:[%s1837_s1 + $0xd0] ss:$8 sps:$4 sm:$0xff]  }
  0x1f   : > { %891 = vmatprep.mubr.bf16.mxu1 %v232_v2  ;;  %v1373_v9 = vld [vmem:[%s1837_s1 + $0x224] ss:$8 sps:$4 sm:$0xff]   ;;  %v236_v10 = vpack.c.bf16 %v229_v8, %v229_v8  ;;  %v1371_v12 = vld [vmem:[%s1837_s1 + $0x220] ss:$8 sps:$4 sm:$0xff]   ;;  %v1379_v14 = vld [vmem:[%s1837_s1 + $0x234] ss:$8 sps:$4 sm:$0xff]  }
  0x20   : > { %v1428_v13 = vld [vmem:[%s1837_s1 + $0xe4] ss:$8 sps:$4 sm:$0xff]   ;;  %v1430_v15 = vld [vmem:[%s1837_s1 + $0xe0] ss:$8 sps:$4 sm:$0xff]   ;;  %v1377_v16 = vld [vmem:[%s1837_s1 + $0x230] ss:$8 sps:$4 sm:$0xff]  }
  0x21   : > { %913 = vmatpush1.bf16.msra.mxu0 %v1322_v19  ;;  %870 = vmatpush1.bf16.msra.mxu1 %v1376_v37  ;;  %v1434_v17 = vld [vmem:[%s1837_s1 + $0xf4] ss:$8 sps:$4 sm:$0xff]   ;;  %v1385_v18 = vld [vmem:[%s1837_s1 + $0x244] ss:$8 sps:$4 sm:$0xff]   ;;  %v1436_v19 = vld [vmem:[%s1837_s1 + $0xf0] ss:$8 sps:$4 sm:$0xff]  }
  0x22   : > { %914 = vmatprep.subr.bf16.mxu0 %v1323_v20  ;;  %871 = vmatprep.subr.bf16.mxu1 %v1380_v38  ;;  %v224_v20 = vld [vmem:[%s1564_s9] sm:$0xff]  ;;  %v1391_v23 = vld [vmem:[%s1837_s1 + $0x254] ss:$8 sps:$4 sm:$0xff]   ;;  %v1413_v38 = vld [vmem:[%s1837_s1 + $0x290] ss:$8 sps:$4 sm:$0xff]  }
  0x23   : > { %v1383_v21 = vld [vmem:[%s1837_s1 + $0x240] ss:$8 sps:$4 sm:$0xff]   ;;  %v1442_v22 = vld [vmem:[%s1837_s1 + $0x304] ss:$8 sps:$4 sm:$0xff]   ;;  %v231_v24 = vpack.c.bf16 %v224_v20, %v224_v20  ;;  %v230_v30 = vld [vmem:[%s1564_s9 + $0x30] sm:$0xff] }
  0x24   : > { %v1446_v27 = vld [vmem:[%s1837_s1 + $0x314] ss:$8 sps:$4 sm:$0x1f]   ;;  %v1397_v29 = vld [vmem:[%s1837_s1 + $0x264] ss:$8 sps:$4 sm:$0xff]   ;;  %v237_v34 = vpack.c.bf16 %v230_v30, %v230_v30 }
  0x25   : > { %915 = vmatpush1.bf16.msra.mxu0 %v1325_v25  ;;  %872 = vmatpush1.bf16.msra.mxu1 %v1382_v41  ;;  %v1389_v25 = vld [vmem:[%s1837_s1 + $0x250] ss:$8 sps:$4 sm:$0xff]   ;;  %v1403_v33 = vld [vmem:[%s1837_s1 + $0x274] ss:$8 sps:$4 sm:$0xff]  }
  0x26   : > { %916 = vmatprep.subr.bf16.mxu0 %v1326_v26  ;;  %873 = vmatprep.subr.bf16.mxu1 %v1386_v42  ;;  %v1440_v26 = vld [vmem:[%s1837_s1 + $0x300] ss:$8 sps:$4 sm:$0xff]   ;;  %v1415_v37 = vld [vmem:[%s1837_s1 + $0x294] ss:$8 sps:$4 sm:$0xff]   ;;  %v1425_v42 = vld [vmem:[%s1837_s1 + $0x2b0] ss:$8 sps:$4 sm:$0xff]  }
  0x27   : > { %v1427_v41 = vld [vmem:[%s1837_s1 + $0x2b4] ss:$8 sps:$4 sm:$0xff]  }
  0x29   : > { %917 = vmatpush1.bf16.msra.mxu0 %v1328_v28  ;;  %874 = vmatpush1.bf16.msra.mxu1 %v1388_v45  ;;  %v1451_v28 = vld [vmem:[%s1837_s1 + $0x310] ss:$8 sps:$4 sm:$0x1f]   ;;  %v1439_v45 = vld [vmem:[%s1837_s1 + $0x2d4] ss:$8 sps:$4 sm:$0xff]  }
  0x2a   : > { %918 = vmatprep.subr.bf16.mxu0 %v1329_v31  ;;  %875 = vmatprep.subr.bf16.mxu1 %v1392_v46  ;;  %v1395_v31 = vld [vmem:[%s1837_s1 + $0x260] ss:$8 sps:$4 sm:$0xff]   ;;  %v1437_v46 = vld [vmem:[%s1837_s1 + $0x2d0] ss:$8 sps:$4 sm:$0xff]  }
  0x2d   : > { %919 = vmatpush1.bf16.msra.mxu0 %v1331_v32  ;;  %876 = vmatpush1.bf16.msra.mxu1 %v1394_v49  ;;  %v854_v32 = vsel %vm852_vm0, %v1451_v28, 0  ;;  %v1450_v49 = vld [vmem:[%s1837_s1 + $0x2f4] ss:$8 sps:$4 sm:$0xff]  }
  0x2e   : > { %920 = vmatprep.subr.bf16.mxu0 %v1332_v35  ;;  %877 = vmatprep.subr.bf16.mxu1 %v1398_v50  ;;  %v1409_v35 = vld [vmem:[%s1837_s1 + $0x284] ss:$8 sps:$4 sm:$0xff]   ;;  %v1448_v50 = vld [vmem:[%s1837_s1 + $0x2f0] ss:$8 sps:$4 sm:$0xff]  }
  0x31   : > { %921 = vmatpush1.bf16.msra.mxu0 %v1334_v36  ;;  %878 = vmatpush1.bf16.msra.mxu1 %v1400_v53  ;;  %v1407_v36 = vld [vmem:[%s1837_s1 + $0x280] ss:$8 sps:$4 sm:$0xff]   ;;  %v340_v53 = vlaneseq }
  0x32   : > { %922 = vmatprep.subr.bf16.mxu0 %v1335_v39  ;;  %879 = vmatprep.subr.bf16.mxu1 %v1404_v54  ;;  %v1421_v39 = vld [vmem:[%s1837_s1 + $0x2a4] ss:$8 sps:$4 sm:$0xff]  }
  0x33   : > { %v341_v54 = vshrl.u32 %v340_v53, 7 }
  0x35   : > { %923 = vmatpush1.bf16.msra.mxu0 %v1337_v40  ;;  %880 = vmatpush1.bf16.msra.mxu1 %v1406_v58  ;;  %v1419_v40 = vld [vmem:[%s1837_s1 + $0x2a0] ss:$8 sps:$4 sm:$0xff]  }
  0x36   : > { %924 = vmatprep.subr.bf16.mxu0 %v1338_v43  ;;  %881 = vmatprep.subr.bf16.mxu1 %v1410_v59  ;;  %v1433_v43 = vld [vmem:[%s1837_s1 + $0x2c4] ss:$8 sps:$4 sm:$0xff]   ;;  %v1026_v58 = vld [vmem:[#allocation2] sm:$0x1] }
  0x37   : > { %1029 = vperm.xlu0 %1301, %v1026_v58   ;;  %v338_v59 = vld [vmem:[%s1838_s2] sm:$0x3] }
  0x39   : > { %925 = vmatpush1.bf16.msra.mxu0 %v1340_v44  ;;  %882 = vmatpush1.bf16.msra.mxu1 %v1412_v62  ;;  %v1431_v44 = vld [vmem:[%s1837_s1 + $0x2c0] ss:$8 sps:$4 sm:$0xff]  }
  0x3a   : > { %926 = vmatprep.subr.bf16.mxu0 %v1341_v47  ;;  %883 = vmatprep.subr.bf16.mxu1 %v1416_v1  ;;  %v1445_v47 = vld [vmem:[%s1837_s1 + $0x2e4] ss:$8 sps:$4 sm:$0xff]  }
  0x3d   : > { %927 = vmatpush1.bf16.msra.mxu0 %v1343_v48  ;;  %884 = vmatpush1.bf16.msra.mxu1 %v1418_v5  ;;  %v1443_v48 = vld [vmem:[%s1837_s1 + $0x2e0] ss:$8 sps:$4 sm:$0xff]  }
  0x3e   : > { %928 = vmatprep.subr.bf16.mxu0 %v1347_v51  ;;  %885 = vmatprep.subr.bf16.mxu1 %v1422_v7  ;;  %v228_v51 = vld [vmem:[%s1564_s9 + $0x20] sm:$0xff]  ;;  %v342_v7 = vsub.s32 0, %v341_v54 }
  0x40   : > { %v343_v8 = vrot.slane %v338_v59, %v342_v7 }
  0x41   : > { %929 = vmatpush1.bf16.msra.mxu0 %v1349_v52  ;;  %886 = vmatpush1.bf16.msra.mxu1 %v1424_v11  ;;  %v235_v52 = vpack.c.bf16 %v228_v51, %v228_v51 }
  0x42   : > { %930 = vmatprep.subr.bf16.mxu0 %v1353_v55  ;;  %887 = vmatprep.subr.bf16.mxu1 %v1428_v13  ;;  %v346_v55 = vsub.s32 1, %v341_v54 }
  0x45   : > { %931 = vmatpush1.bf16.msra.mxu0 %v1355_v56  ;;  %888 = vmatpush1.bf16.msra.mxu1 %v1430_v15  ;;  %v1025_v56 = vld [vmem:[%s1839_s3] sm:$0x3] }
  0x46   : > { %941 = vmatprep.subr.bf16.mxu0 %v1361_v60  ;;  %889 = vmatprep.subr.bf16.mxu1 %v1434_v17  ;;  %v1044_v57 = vrot.slane %v1025_v56, %v346_v55  ;;  %v347_v60 = vrot.slane %v338_v59, %v346_v55  ;;  %v1040_v20 = vrot.slane %v1025_v56, %v342_v7 }
  0x48   : > { %933 = vmatmul.mubr.bf16.vlgmr.msra.gmra.mrb[0].mxu0 %v233_v61 }
  0x49   : > { %942 = vmatpush1.bf16.msra.mxu0 %v1359_v0  ;;  %973 = vmatprep.mubr.bf16.mxu0 %v236_v10 }
  0x4a   : > { %943 = vmatprep.subr.bf16.mxu0 %v1367_v3  ;;  %890 = vmatpush1.bf16.msra.mxu1 %v1436_v19 }
  0x4b   : > { %982 = vmatprep.subr.bf16.mxu1 %v1442_v22 }
  0x4d   : > { %944 = vmatpush1.bf16.msra.mxu0 %v1365_v6  ;;  %892 = vmatmul.mubr.bf16.vlgmr.msra.gmra.mrb[0].mxu1 %v231_v24 }
  0x4e   : > { %945 = vmatprep.subr.bf16.mxu0 %v1373_v9  ;;  %983 = vmatpush1.bf16.msra.mxu1 %v1440_v26 }
  0x4f   : > { %1014 = vmatprep.mubr.bf16.mxu1 %v1464_v4  ;;  %1277 = vmatprep.subr.msk.bf16.mxu1 %vm852_vm0, %v1446_v27  ;;  %v1401_v4 = vld [vmem:[%s1837_s1 + $0x270] ss:$8 sps:$4 sm:$0xff]  }
  0x51   : > { %946 = vmatpush1.bf16.msra.mxu0 %v1371_v12 }
  0x52   : > { %947 = vmatprep.subr.bf16.mxu0 %v1379_v14  ;;  %985 = vmatpush1.bf16.msra.mxu1 %v854_v32 }
  0x55   : > { %948 = vmatpush1.bf16.msra.mxu0 %v1377_v16  ;;  %1278 = vmatmul.mubr.msk.bf16.vlgmr.msra.gmra.mrb[4].mxu1 %vm848_vm1, %v237_v34 }
  0x56   : > { %949 = vmatprep.subr.bf16.mxu0 %v1385_v18  ;;  %1111 = vmatprep.mubr.f32.mxu1 %v1044_v57 }
  0x59   : > { %950 = vmatpush1.bf16.msra.mxu0 %v1383_v21 }
  0x5a   : > { %951 = vmatprep.subr.bf16.mxu0 %v1391_v23 }
  0x5d   : > { %952 = vmatpush1.bf16.msra.mxu0 %v1389_v25 }
  0x5e   : > { %953 = vmatprep.subr.bf16.mxu0 %v1397_v29 }
  0x61   : > { %954 = vmatpush1.bf16.msra.mxu0 %v1395_v31 }
  0x62   : > { %955 = vmatprep.subr.bf16.mxu0 %v1403_v33 }
  0x65   : > { %956 = vmatpush1.bf16.msra.mxu0 %v1401_v4 }
  0x66   : > { %957 = vmatprep.subr.bf16.mxu0 %v1409_v35 }
  0x69   : > { %958 = vmatpush1.bf16.msra.mxu0 %v1407_v36 }
  0x6a   : > { %959 = vmatprep.subr.bf16.mxu0 %v1415_v37 }
  0x6d   : > { %960 = vmatpush1.bf16.msra.mxu0 %v1413_v38 }
  0x6e   : > { %961 = vmatprep.subr.bf16.mxu0 %v1421_v39 }
  0x71   : > { %962 = vmatpush1.bf16.msra.mxu0 %v1419_v40 }
  0x72   : > { %963 = vmatprep.subr.bf16.mxu0 %v1427_v41 }
  0x75   : > { %964 = vmatpush1.bf16.msra.mxu0 %v1425_v42 }
  0x76   : > { %965 = vmatprep.subr.bf16.mxu0 %v1433_v43 }
  0x79   : > { %966 = vmatpush1.bf16.msra.mxu0 %v1431_v44 }
  0x7a   : > { %967 = vmatprep.subr.bf16.mxu0 %v1439_v45 }
  0x7d   : > { %968 = vmatpush1.bf16.msra.mxu0 %v1437_v46 }
  0x7e   : > { %969 = vmatprep.subr.bf16.mxu0 %v1445_v47 }
  0x81   : > { %970 = vmatpush1.bf16.msra.mxu0 %v1443_v48 }
  0x82   : > { %971 = vmatprep.subr.bf16.mxu0 %v1450_v49 }
  0x85   : > { %972 = vmatpush1.bf16.msra.mxu0 %v1448_v50 }
  0x88   : > { %974 = vmatmul.mubr.bf16.vlgmr.msra.gmra.mrb[0].mxu0 %v235_v52 }
  0xb6   : > { %v1030_v21 = vpop.permute.xlu0 %1029 }
  0xb7   : > { %v1035_v22 = vrot.slane %v1030_v21, %v342_v7 }
 0x120   : > { %v893_v61 = vpop.f32.mrb[0].mxu1 }
 0x121   : > { %v895_v62 = vpop.f32.mrb[1].mxu1  ;;  %v894_v9 = vadd.f32 %v893_v61, %v343_v8 }
 0x122   : > { %v896_v63 = vadd.f32 %v895_v62, %v347_v60  ;;  %v897_v0 = vpop.f32.mrb[2].mxu1 }
 0x123   : > { %v898_v1 = vpop.f32.mrb[3].mxu1 }
 0x128   : > { %v1016_v2 = vpop.f32.mrb[4].mxu1 }
 0x129   : > { %v1018_v3 = vpop.f32.mrb[5].mxu1 }
 0x12a   : > { %v1020_v5 = vpop.f32.mrb[6].mxu1 }
 0x12b   : > { %v1021_v6 = vpop.f32.mrb[7].mxu1 }
 0x15b   : > { %v975_v10 = vpop.f32.mrb[0].mxu0 }
 0x15c   : > { %v1282_v11 = vadd.f32 %v975_v10, %v894_v9  ;;  %v977_v12 = vpop.f32.mrb[1].mxu0 }
 0x15d   : > { %v1285_v13 = vadd.f32 %v977_v12, %v896_v63  ;;  %v979_v14 = vpop.f32.mrb[2].mxu0 }
 0x15e   : > { %v1283_v15 = vadd.f32 %v1282_v11, %v1016_v2  ;;  %v980_v16 = vpop.f32.mrb[3].mxu0 }
 0x15f   : > { %v1286_v17 = vadd.f32 %v1285_v13, %v1018_v3 }
 0x160   : > { %v1023_v19 = vmax.f32 %v1283_v15, 0.0 }
 0x161   : > { %v1024_v18 = vmax.f32 %v1286_v17, 0.0 }
 0x163   : > { %1047 = vmatprep.subr.mxu1 %v1024_v18 }
 0x164   : > { %1048 = vmatpush1.xpose.msra.mxu1 %v1023_v19 }
 0x167   : > { %1112 = vmatmul.mubr.f32.vlgmr.msra.gmra.mrb[8].mxu1 %v1040_v20 }
 0x23a   : > { %v1113_v23 = vpop.f32.mrb[8].mxu1 }
 0x23b   : > { %v1114_v24 = vadd.f32 %v1113_v23, %v1035_v22  ;;  %v1115_v25 = vpop.f32.mrb[9].mxu1 }
 0x23d   : > { %v1117_v26 = vsub.f32 0.0, %v1114_v24 }
 0x23f   : > { %v1118_v27 = vmul.f32 1.442695, %v1117_v26 }
 0x241   : > { %1452 = vpow2.f32 %v1118_v27 }
 0x24b   : > { %v1453_v28 = vpop.eup %1452 }
 0x24c   : > { %v1120_v29 = vadd.f32 1.0, %v1453_v28 }
 0x24e   : > { %1454 = vrcp.f32 %v1120_v29 }
 0x258   : > { %v1455_v30 = vpop.eup %1454 }
 0x259   : > { %1123 = vst.msk [vmem:[%s222_s22] sm:$0x1] %vm1122_vm2, %v1455_v30 }
 0x25a PF: > { %s17_s20 = sadd.s32 1, %s1462_s20  }
 0x25b   : > { %p14_p4 = scmp.ge.s32.totalorder %s17_s20, 4  }
 0x25d   :  { %16 = sbr.rel (!%p14_p4) target bundleno = 3 (0x3), region = 70 }

</bundles_post_ra>
